<compile_context>
chip_gen: v5e
topology: v5e:2x2
jax: 0.10.0
libtpu: 0.0.40
codegen_flags: <defaults>
</compile_context>

<pallas_src>
import jax
import jax.numpy as jnp
from jax.experimental import pallas as pl
from jax.experimental.pallas import tpu as pltpu


def _value_mlp_kernel(x_ref, w1_ref, b1_ref, w2_ref, b2_ref, w3_ref, b3_ref,
                      o_ref):
    # Layer 1: (TILE_B, D) @ (D, H) on the MXU.  x arrives as f32 and is cast
    # to bf16 in-register (free on the VPU under MXU/DMA slack); f32 accumulate.
    x_bf = x_ref[...].astype(jnp.bfloat16)
    h = jnp.dot(x_bf, w1_ref[...], preferred_element_type=jnp.float32)
    h = jnp.maximum(h + b1_ref[...], 0.0)
    # Layer 2: (TILE_B, H) @ (H, H) on the MXU (bf16 in, f32 accumulate).
    h = jnp.dot(h.astype(w2_ref.dtype), w2_ref[...],
                preferred_element_type=jnp.float32)
    h = jnp.maximum(h + b2_ref[...], 0.0)
    # Output head: (TILE_B, H) x (H,) as a VPU multiply + XLU lane reduce
    # (an N=1 MXU matmul would use 1/128 output columns).  Written lane-dense
    # as a (1, TILE_B) row; b3 is a scalar read from SMEM.
    v = jnp.sum(h * w3_ref[...], axis=-1) + b3_ref[0, 0]
    o_ref[...] = v[None, :].astype(o_ref.dtype)


def prepare_params(params):
    """One-time cast/reshape of parameters into kernel-ready operands.

    Hoisted out of the per-call path so an RL inner loop does not pay six tiny
    XLA dispatch ops per forward call.
    """
    w1, b1, w2, b2, w3, b3 = params
    H = w1.shape[1]
    return (
        w1.astype(jnp.bfloat16),                    # MXU path
        b1.reshape(1, H).astype(jnp.float32),       # f32 epilogue
        w2.astype(jnp.bfloat16),
        b2.reshape(1, H).astype(jnp.float32),
        jnp.reshape(w3, (1, H)).astype(jnp.float32),
        jnp.reshape(b3, (1, 1)).astype(jnp.float32),
    )


def _choose_tile_b(batch, desired=512):
    """Biggest lane-aligned tile <= `desired` that still gives >= 2 grid steps.

    >= 2 steps lets dimension_semantics=("parallel",) occupy both TensorCores
    on v7x; multiples of 128 keep the (1, TILE_B) output blocks unmasked.
    """
    half = pl.cdiv(batch, 2)
    half_aligned = ((half + 127) // 128) * 128
    return max(128, min(desired, half_aligned))


def value_network_forward(x, prepared_params, *, tile_b=None):
    """x: (B, state_dim) float32, prepared_params from prepare_params().

    Returns (B, 1) float32.
    """
    w1_bf, b1_f, w2_bf, b2_f, w3_row, b3_s = prepared_params
    B, D = x.shape

    if tile_b is None:
        tile_b = _choose_tile_b(B)

    num_tiles = pl.cdiv(B, tile_b)
    b_pad = num_tiles * tile_b
    if b_pad != B:
        # Only the ragged tail case pays this; guarantees zero (not garbage /
        # NaN) rows feed the MXU for the out-of-range lanes we later drop.
        x = jnp.pad(x, ((0, b_pad - B), (0, 0)))

    def const_spec(shape):
        # Constant block index -> operand stays VMEM-resident across the grid.
        return pl.BlockSpec(shape, lambda i: tuple(0 for _ in shape))

    out = pl.pallas_call(
        _value_mlp_kernel,
        out_shape=jax.ShapeDtypeStruct((1, b_pad), jnp.float32),
        grid=(num_tiles,),
        in_specs=[
            pl.BlockSpec((tile_b, D), lambda i: (i, 0)),        # streamed x (f32)
            const_spec(w1_bf.shape),
            const_spec(b1_f.shape),
            const_spec(w2_bf.shape),
            const_spec(b2_f.shape),
            const_spec(w3_row.shape),
            pl.BlockSpec(memory_space=pltpu.MemorySpace.SMEM),  # scalar b3
        ],
        out_specs=pl.BlockSpec((1, tile_b), lambda i: (0, i)),  # lane-dense
        compiler_params=pltpu.CompilerParams(
            dimension_semantics=("parallel",),
            vmem_limit_bytes=32 * 1024 * 1024,
        ),
    )(x, w1_bf, b1_f, w2_bf, b2_f, w3_row, b3_s)

    return out[0, :B].reshape(B, 1)


def init_params(key, state_dim, hidden_dim):
    """Deterministic synthetic parameters (shapes from the SAC value net)."""
    ks = jax.random.split(key, 6)
    scale = 0.1
    w1 = scale * jax.random.normal(ks[0], (state_dim, hidden_dim), jnp.float32)
    b1 = scale * jax.random.normal(ks[1], (1, hidden_dim), jnp.float32)
    w2 = scale * jax.random.normal(ks[2], (hidden_dim, hidden_dim), jnp.float32)
    b2 = scale * jax.random.normal(ks[3], (1, hidden_dim), jnp.float32)
    w3 = scale * jax.random.normal(ks[4], (hidden_dim, 1), jnp.float32)
    b3 = scale * jax.random.normal(ks[5], (1, 1), jnp.float32)
    return (w1, b1, w2, b2, w3, b3)


def reference_forward(x, params, *, bf16=True):
    """Plain-JAX reference; bf16=True mirrors the kernel's MXU casts."""
    w1, b1, w2, b2, w3, b3 = params
    if bf16:
        x = x.astype(jnp.bfloat16)
        w1 = w1.astype(jnp.bfloat16)
        w2 = w2.astype(jnp.bfloat16)
    h = jnp.dot(x, w1, preferred_element_type=jnp.float32) + b1
    h = jnp.maximum(h, 0.0)
    h = jnp.dot(h.astype(w2.dtype), w2,
                preferred_element_type=jnp.float32) + b2
    h = jnp.maximum(h, 0.0)
    return jnp.dot(h, w3.astype(jnp.float32),
                   preferred_element_type=jnp.float32) + b3


if __name__ == "__main__":
    batch = 256        # -> tile_b=128, two "parallel" grid steps (v7x megacore)
    state_dim = 16
    hidden_dim = 128   # lane-aligned hidden width

    key = jax.random.PRNGKey(0)
    k_x, k_p = jax.random.split(key)
    x = jax.random.normal(k_x, (batch, state_dim), jnp.float32)
    params = init_params(k_p, state_dim, hidden_dim)

    # Hoisted, one-time param prep; jit closes over the kernel-ready params so
    # the per-call path is just the fused Pallas kernel.
    prepped = prepare_params(params)
    fwd = jax.jit(lambda xb: value_network_forward(xb, prepped))

    out = jax.block_until_ready(fwd(x))

    ref_bf16 = reference_forward(x, params, bf16=True)   # matched precision
    ref_f32 = reference_forward(x, params, bf16=False)   # full-f32 semantics

    assert out.shape == (batch, 1), out.shape
    assert jnp.allclose(out, ref_bf16, atol=1e-2, rtol=1e-2), (
        float(jnp.max(jnp.abs(out - ref_bf16))))
    assert jnp.allclose(out, ref_f32, atol=5e-2, rtol=5e-2), (
        float(jnp.max(jnp.abs(out - ref_f32))))

    # Ragged-batch path (exercises the conditional tail pad + output slice).
    x_odd = x[:200]
    out_odd = jax.block_until_ready(value_network_forward(x_odd, prepped))
    assert out_odd.shape == (200, 1), out_odd.shape
    assert jnp.allclose(out_odd, ref_bf16[:200], atol=1e-2, rtol=1e-2), (
        float(jnp.max(jnp.abs(out_odd - ref_bf16[:200]))))

    print("KERNEL_OK")
</pallas_src>

<mosaic_0001>
module attributes {stable_mosaic.version = 11 : i64} {
  func.func @_value_mlp_kernel(%arg0: i32, %arg1: memref<128x16xf32, #tpu.memory_space<vmem>>, %arg2: memref<16x128xbf16, #tpu.memory_space<vmem>>, %arg3: memref<1x128xf32, #tpu.memory_space<vmem>>, %arg4: memref<128x128xbf16, #tpu.memory_space<vmem>>, %arg5: memref<1x128xf32, #tpu.memory_space<vmem>>, %arg6: memref<1x128xf32, #tpu.memory_space<vmem>>, %arg7: memref<1x1xf32, #tpu.memory_space<smem>>, %arg8: memref<1x128xf32, #tpu.memory_space<vmem>>) attributes {dimension_semantics = [#tpu.dimension_semantics<parallel>], iteration_bounds = array<i64: 2>, scalar_prefetch = 0 : i64, scratch_operands = 0 : i64, tpu.core_type = #tpu.core_type<tc>, window_params = [{transform_indices = @transform_0, window_bounds = array<i64: 128, 16>}, {pipeline_mode = #tpu.pipeline_mode<synchronous>, transform_indices = @transform_1, window_bounds = array<i64: 16, 128>}, {pipeline_mode = #tpu.pipeline_mode<synchronous>, transform_indices = @transform_2, window_bounds = array<i64: 1, 128>}, {pipeline_mode = #tpu.pipeline_mode<synchronous>, transform_indices = @transform_3, window_bounds = array<i64: 128, 128>}, {pipeline_mode = #tpu.pipeline_mode<synchronous>, transform_indices = @transform_4, window_bounds = array<i64: 1, 128>}, {pipeline_mode = #tpu.pipeline_mode<synchronous>, transform_indices = @transform_5, window_bounds = array<i64: 1, 128>}, {transform_indices = @transform_6, window_bounds = array<i64: 1, 1>}, {transform_indices = @transform_7, window_bounds = array<i64: 1, 128>}]} {
    %c0 = arith.constant 0 : index
    %c0_0 = arith.constant 0 : index
    %0 = vector.load %arg1[%c0, %c0_0] : memref<128x16xf32, #tpu.memory_space<vmem>>, vector<128x16xf32>
    %1 = arith.truncf %0 : vector<128x16xf32> to vector<128x16xbf16>
    %c0_1 = arith.constant 0 : index
    %c0_2 = arith.constant 0 : index
    %2 = vector.load %arg2[%c0_1, %c0_2] : memref<16x128xbf16, #tpu.memory_space<vmem>>, vector<16x128xbf16>
    %cst = arith.constant dense<0.000000e+00> : vector<128x128xf32>
    %3 = tpu.matmul %1, %2, %cst {dimension_numbers = #tpu.dot_dimension_numbers<[1], [0], [0], [1], [0, 0, 1, 1], [], []>} : vector<128x16xbf16>, vector<16x128xbf16>, vector<128x128xf32> -> vector<128x128xf32>
    %c0_3 = arith.constant 0 : index
    %c0_4 = arith.constant 0 : index
    %4 = vector.load %arg3[%c0_3, %c0_4] : memref<1x128xf32, #tpu.memory_space<vmem>>, vector<1x128xf32>
    %5 = vector.broadcast %4 : vector<1x128xf32> to vector<128x128xf32>
    %6 = arith.addf %3, %5 : vector<128x128xf32>
    %cst_5 = arith.constant 0.000000e+00 : f32
    %7 = vector.broadcast %cst_5 : f32 to vector<128x128xf32>
    %8 = arith.maximumf %6, %7 : vector<128x128xf32>
    %9 = arith.truncf %8 : vector<128x128xf32> to vector<128x128xbf16>
    %c0_6 = arith.constant 0 : index
    %c0_7 = arith.constant 0 : index
    %10 = vector.load %arg4[%c0_6, %c0_7] : memref<128x128xbf16, #tpu.memory_space<vmem>>, vector<128x128xbf16>
    %cst_8 = arith.constant dense<0.000000e+00> : vector<128x128xf32>
    %11 = tpu.matmul %9, %10, %cst_8 {dimension_numbers = #tpu.dot_dimension_numbers<[1], [0], [0], [1], [0, 0, 1, 1], [], []>} : vector<128x128xbf16>, vector<128x128xbf16>, vector<128x128xf32> -> vector<128x128xf32>
    %c0_9 = arith.constant 0 : index
    %c0_10 = arith.constant 0 : index
    %12 = vector.load %arg5[%c0_9, %c0_10] : memref<1x128xf32, #tpu.memory_space<vmem>>, vector<1x128xf32>
    %13 = vector.broadcast %12 : vector<1x128xf32> to vector<128x128xf32>
    %14 = arith.addf %11, %13 : vector<128x128xf32>
    %cst_11 = arith.constant 0.000000e+00 : f32
    %15 = vector.broadcast %cst_11 : f32 to vector<128x128xf32>
    %16 = arith.maximumf %14, %15 : vector<128x128xf32>
    %c0_12 = arith.constant 0 : index
    %c0_13 = arith.constant 0 : index
    %17 = vector.load %arg6[%c0_12, %c0_13] : memref<1x128xf32, #tpu.memory_space<vmem>>, vector<1x128xf32>
    %18 = vector.broadcast %17 : vector<1x128xf32> to vector<128x128xf32>
    %19 = arith.mulf %16, %18 : vector<128x128xf32>
    %cst_14 = arith.constant dense<0.000000e+00> : vector<128xf32>
    %20 = vector.multi_reduction <add>, %19, %cst_14 [1] : vector<128x128xf32> to vector<128xf32>
    %c0_15 = arith.constant 0 : index
    %c0_16 = arith.constant 0 : index
    %21 = memref.load %arg7[%c0_15, %c0_16] : memref<1x1xf32, #tpu.memory_space<smem>>
    %22 = vector.broadcast %21 : f32 to vector<128xf32>
    %23 = arith.addf %20, %22 : vector<128xf32>
    %24 = vector.shape_cast %23 : vector<128xf32> to vector<1x128xf32>
    %c0_17 = arith.constant 0 : index
    %c0_18 = arith.constant 0 : index
    %25 = vector.load %arg8[%c0_17, %c0_18] : memref<1x128xf32, #tpu.memory_space<vmem>>, vector<1x128xf32>
    tpu.vector_store %arg8[%c0_17, %c0_18], %24 {strides = array<i32>} : memref<1x128xf32, #tpu.memory_space<vmem>>, vector<1x128xf32>,
    return
  }
  func.func @transform_0(%arg0: i32) -> (i32, i32) {
    %c0_i32 = arith.constant 0 : i32
    %c0_i32_0 = arith.constant 0 : i32
    return %arg0, %c0_i32 : i32, i32
  }
  func.func @transform_1(%arg0: i32) -> (i32, i32) {
    %c0_i32 = arith.constant 0 : i32
    %c0_i32_0 = arith.constant 0 : i32
    %c0_i32_1 = arith.constant 0 : i32
    return %c0_i32, %c0_i32_0 : i32, i32
  }
  func.func @transform_2(%arg0: i32) -> (i32, i32) {
    %c0_i32 = arith.constant 0 : i32
    %c0_i32_0 = arith.constant 0 : i32
    %c0_i32_1 = arith.constant 0 : i32
    return %c0_i32, %c0_i32_0 : i32, i32
  }
  func.func @transform_3(%arg0: i32) -> (i32, i32) {
    %c0_i32 = arith.constant 0 : i32
    %c0_i32_0 = arith.constant 0 : i32
    %c0_i32_1 = arith.constant 0 : i32
    return %c0_i32, %c0_i32_0 : i32, i32
  }
  func.func @transform_4(%arg0: i32) -> (i32, i32) {
    %c0_i32 = arith.constant 0 : i32
    %c0_i32_0 = arith.constant 0 : i32
    %c0_i32_1 = arith.constant 0 : i32
    return %c0_i32, %c0_i32_0 : i32, i32
  }
  func.func @transform_5(%arg0: i32) -> (i32, i32) {
    %c0_i32 = arith.constant 0 : i32
    %c0_i32_0 = arith.constant 0 : i32
    %c0_i32_1 = arith.constant 0 : i32
    return %c0_i32, %c0_i32_0 : i32, i32
  }
  func.func @transform_6(%arg0: i32) -> (i32, i32) {
    %c0_i32 = arith.constant 0 : i32
    %c0_i32_0 = arith.constant 0 : i32
    %c0_i32_1 = arith.constant 0 : i32
    return %c0_i32, %c0_i32_0 : i32, i32
  }
  func.func @transform_7(%arg0: i32) -> (i32, i32) {
    %c0_i32 = arith.constant 0 : i32
    %c0_i32_0 = arith.constant 0 : i32
    return %c0_i32, %arg0 : i32, i32
  }
}

</mosaic_0001>

<bundles_post_ra>
// kernel: _lambda_.1
= control target key start
LH: loop header
LB: loop body
LE: loop exit
PB: predicated region body
PF: predicated region fallthrough
CT: control target
= control target key end

     0   :  { %s1214_s0 = inlined_call_operand.vmem [shape: f32[256,16], index: 0, kind: input, shape index: {}]   ;;  %s1215_s1 = inlined_call_operand.vmem [shape: bf16[16,128], index: 1, kind: input, shape index: {}]   ;;  %s1216_s2 = inlined_call_operand.vmem [shape: f32[1,128], index: 2, kind: input, shape index: {}]   ;;  %s1217_s3 = inlined_call_operand.vmem [shape: bf16[128,128], index: 3, kind: input, shape index: {}]   ;;  %s1218_s4 = inlined_call_operand.vmem [shape: f32[1,128], index: 4, kind: input, shape index: {}]   ;;  %s1219_s5 = inlined_call_operand.vmem [shape: f32[1,128], index: 5, kind: input, shape index: {}]   ;;  %s1220_s6 = inlined_call_operand.<no memory space> [shape: f32[1,1], index: 6, kind: input, shape index: {}]   ;;  %s1221_s7 = inlined_call_operand.hbm [shape: f32[1,256], index: 7, kind: output, shape index: {}]  }
   0x1   :  { %12 = sst [smem:[#allocation2]] %s1220_s6 }
   0x2   :  { %13 = vsyncpa [#allocation4], 0 }
   0x3   :  { %15 = vsyncpa [#allocation4 + $0x1], 0  ;;  %s985_s26 = smov 0   ;;  %s987_s27 = smov 0  }
   0x4   :  { %s989_s28 = smov 0   ;;  %s991_s29 = smov 0  }
   0x5 LB: > { %s1006_s6 = sadd.s32 4294967295, %s940_s29   ;;  %s766_s30 = sadd.s32 4294967294, %s940_s29   ;;  %s940_s29 = sphi %s991_s29, %s1227_s29   ;;  %s936_s28 = sphi %s989_s28, %s1226_s28   ;;  %s932_s27 = sphi %s987_s27, %s1225_s27   ;;  %s928_s26 = sphi %s985_s26, %s1224_s26  }
   0x6   : > { %s1010_s8 = sadd.s32 1, %s940_s29   ;;  %s180_s9 = sadd.s32 1, %s936_s28 }
   0x7   : > { %s177_s10 = ssub.s32 %s940_s29, %s1010_s8  ;;  %p190_p0 = scmp.ne.s32.totalorder %s936_s28, %s932_s27 }
   0x8   : > { %p178_p1 = scmp.eq.s32.totalorder %s177_s10, 0  ;;  %p191_p2 = scmp.eq.s32.totalorder %s1006_s6, 1 }
   0x9   : > { %p196_p3 = scmp.ne.s32.totalorder %s932_s27, %s928_s26  ;;  %p197_p4 = scmp.eq.s32.totalorder %s766_s30, 1 }
   0xa   : > { %s1021_s11 = scalar_select %p178_p1, %s936_s28, %s180_s9  }
   0xb   : > { %p1023_p5 = por %p191_p2, %p190_p0  ;;  %p1027_p6 = por %p197_p4, %p196_p3 }
   0xc   : > { %p769_p7 = scmp.ge.s32.totalorder %s940_s29, 1  ;;  %p242_p8 = scmp.lt.s32.totalorder %s940_s29, 3 }
   0xe   : > { %p243_p9 = pnand %p769_p7, %p242_p8 }
   0xf   : > { %s770_s16 = sshll.u32 (!%p243_p9), %s1006_s6, 4  ;;  %s599_s10 = sld [smem:[#allocation2]] (!%p243_p9) }
  0x10   : > { %246 = sbr.rel (%p243_p9) target bundleno = 549 (0x225), region = 48  ;;  %p274_p10 = scmp.lt.s32.totalorder (!%p243_p9), %s770_s16, 31 }
  0x11   : > { %s271_s14 = sand.u32 (!%p243_p9), 1, %s932_s27   ;;  %s898_s25 = scalar_lea.hbm (!%p243_p9), %s1221_s7, 2 }
  0x12   : > { %s272_s18 = scalar_lea.vmem (!%p243_p9), [#allocation3], %s271_s14 }
  0x13   : > { %s709_s19 = sshll.u32 (!%p243_p9), %s272_s18, 4  ;;  %s710_s19 = int_to_ptr.vmem [resolvable:$true] %s709_s19 }
  0x15   : > { %v818_v0 = vld [vmem:[%s1215_s1] sm:$0xff]  ;;  %s1229_s16 = smov (!%p274_p10, %s770_s16), 31  ;;  %vm316_vm0 = vcmask 130048   ;;  %v826_v13 = vld [vmem:[%s1217_s3 + $0x38] sm:$0xff]  ;;  %v825_v14 = vld [vmem:[%s1217_s3 + $0x30] sm:$0xff]  ;;  %vm638_vm1 = vcmask 130112  }
  0x16   : > { %348 = vmatpush.bf16.msra.mxu0 %v818_v0  ;;  %827 = vmatpush.bf16.msra.mxu3 %v818_v0  ;;  %s771_s17 = sshll.u32 %s1229_s16, 3  ;;  %v824_v15 = vld [vmem:[%s1217_s3 + $0x28] sm:$0xff]  ;;  %v823_v21 = vld [vmem:[%s1217_s3 + $0x20] sm:$0xff]  ;;  %v822_v29 = vld [vmem:[%s1217_s3 + $0x18] sm:$0xff]  ;;  %vm642_vm2 = vcmask 195712   ;;  %vm646_vm3 = vcmask 261312  }
  0x17   : > { %s1040_s20 = scalar_lea.vmem %s1214_s0, %s771_s17  ;;  %482 = vmatpush.bf16.msra.mxu1 %v826_v13  ;;  %828 = vmatpush.bf16.msra.mxu2 %v826_v13  ;;  %v821_v30 = vld [vmem:[%s1217_s3 + $0x10] sm:$0xff]  ;;  %v820_v31 = vld [vmem:[%s1217_s3 + $0x8] sm:$0xff]  ;;  %v819_v32 = vld [vmem:[%s1217_s3] sm:$0xff]  ;;  %vm650_vm4 = vcmask 326912   ;;  %vm654_vm5 = vcmask 392512   ;;  %vm658_vm6 = vcmask 458112   ;;  %s707_s17 = scalar_lea.hbm %s1221_s7, %s1006_s6 }
  0x18   : > { %v280_v1 = vld [vmem:[%s1040_s20] sm:$0xff]  ;;  %v281_v2 = vld [vmem:[%s1040_s20 + $0x8] sm:$0xff]  ;;  %v282_v4 = vld [vmem:[%s1040_s20 + $0x10] sm:$0xff]  ;;  %vm662_vm7 = vcmask 523712   ;;  %vm666_vm8 = vcmask 589312   ;;  %vm670_vm9 = vcmask 654912  }
  0x19   : > { %v296_v3 = vpack.c.bf16 %v281_v2, %v280_v1  ;;  %v283_v5 = vld [vmem:[%s1040_s20 + $0x18] sm:$0xff]  ;;  %v284_v7 = vld [vmem:[%s1040_s20 + $0x20] sm:$0xff]  ;;  %v285_v8 = vld [vmem:[%s1040_s20 + $0x28] sm:$0xff]  ;;  %vm674_vm10 = vcmask 720512   ;;  %vm678_vm11 = vcmask 786112   ;;  %vm682_vm12 = vcmask 851712  }
  0x1a   : > { %v297_v6 = vpack.c.bf16 %v283_v5, %v282_v4  ;;  %v298_v9 = vpack.c.bf16 %v285_v8, %v284_v7  ;;  %v290_v10 = vld [vmem:[%s1040_s20 + $0x50] sm:$0xff]  ;;  %v291_v11 = vld [vmem:[%s1040_s20 + $0x58] sm:$0xff]  ;;  %v292_v18 = vld [vmem:[%s1040_s20 + $0x60] sm:$0xff]  ;;  %vm686_vm13 = vcmask 917312   ;;  %vm690_vm14 = vcmask 982912   ;;  %s711_s6 = sshll.u32 %s707_s17, 4  ;;  %s712_s6 = int_to_ptr.hbm [resolvable:$true] %s711_s6 }
  0x1b   : > { %776 = vmatmul.msk.bf16.vlgmr.msra.gmra.mxu0 %vm316_vm0, %v296_v3  ;;  %v301_v12 = vpack.c.bf16 %v291_v11, %v290_v10  ;;  %483 = vmatpush.bf16.msra.mxu1 %v825_v14  ;;  %v286_v16 = vld [vmem:[%s1040_s20 + $0x30] sm:$0xff]  ;;  %v287_v17 = vld [vmem:[%s1040_s20 + $0x38] sm:$0xff]  ;;  %v293_v19 = vld [vmem:[%s1040_s20 + $0x68] sm:$0xff]  ;;  %vm694_vm15 = vcmask 1048512   ;;  %s892_s21 = sshra.s32 %s712_s6, 4  ;;  %s893_s21 = int_to_ptr.hbm [resolvable:$true] %s892_s21 }
  0x1c   : > { %829 = vmatpush.bf16.msra.mxu2 %v825_v14  ;;  %v299_v20 = vpack.c.bf16 %v287_v17, %v286_v16  ;;  %v302_v22 = vpack.c.bf16 %v293_v19, %v292_v18  ;;  %v288_v23 = vld [vmem:[%s1040_s20 + $0x40] sm:$0xff]  ;;  %v289_v24 = vld [vmem:[%s1040_s20 + $0x48] sm:$0xff]  ;;  %v294_v25 = vld [vmem:[%s1040_s20 + $0x70] sm:$0xff]  ;;  %s894_s22 = scalar_lea.hbm %s893_s21, 1  ;;  %p899_p0 = scmp.lt.s32.totalorder %s893_s21, %s1221_s7 }
  0x1d   : > { %781 = vmatmul.msk.bf16.vlgmr.msra.gmra.mxu3 %vm316_vm0, %v301_v12  ;;  %v295_v26 = vld [vmem:[%s1040_s20 + $0x78] sm:$0xff]  ;;  %v300_v27 = vpack.c.bf16 %v289_v24, %v288_v23  ;;  %v875_v34 = vld [vmem:[%s1216_s2] ss:$0 sm:$0xff]  ;;  %s699_s20 = scalar_lea.sflag [#allocation4], %s271_s14  ;;  %p895_p11 = scmp.ne.s32.totalorder %s893_s21, %s894_s22 }
  0x1e   : > { %v303_v28 = vpack.c.bf16 %v295_v26, %v294_v25  ;;  %v1096_v26 = vld [vmem:[%s1218_s4] ss:$0 sm:$0xff]  ;;  %p900_p1 = scmp.lt.s32.totalorder %s898_s25, %s894_s22 }
  0x1f   : > { %484 = vmatpush.bf16.msra.mxu1 %v824_v15  ;;  %p896_p12 = pnand %p895_p11, %p1023_p5 }
  0x20   : > { %830 = vmatpush.bf16.msra.mxu2 %v824_v15  ;;  %p901_p2 = por %p900_p1, %p899_p0 }
  0x21   : > { %p897_p13 = pneg %p896_p12 }
  0x23   : > { %485 = vmatpush.bf16.msra.mxu1 %v823_v21  ;;  %p902_p3 = pnand %p901_p2, %p897_p13 }
  0x24   : > { %831 = vmatpush.bf16.msra.mxu2 %v823_v21 }
  0x27   : > { %486 = vmatpush.bf16.msra.mxu1 %v822_v29 }
  0x28   : > { %832 = vmatpush.bf16.msra.mxu2 %v822_v29  ;;  %v1102_v29 = vld [vmem:[%s1219_s5] ss:$0 sm:$0xff] }
  0x2b   : > { %777 = vmatmul.msk.bf16.gmra.mxu0 %vm316_vm0, %v297_v6  ;;  %487 = vmatpush.bf16.msra.mxu1 %v821_v30 }
  0x2c   : > { %833 = vmatpush.bf16.msra.mxu2 %v821_v30 }
  0x2d   : > { %782 = vmatmul.msk.bf16.gmra.mxu3 %vm316_vm0, %v302_v22 }
  0x2f   : > { %488 = vmatpush.bf16.msra.mxu1 %v820_v31 }
  0x30   : > { %834 = vmatpush.bf16.msra.mxu2 %v820_v31 }
  0x33   : > { %489 = vmatpush.bf16.msra.mxu1 %v819_v32 }
  0x34   : > { %835 = vmatpush.bf16.msra.mxu2 %v819_v32 }
  0x3b   : > { %778 = vmatmul.msk.bf16.gmra.mxu0 %vm316_vm0, %v298_v9 }
  0x3d   : > { %783 = vmatmul.msk.bf16.gmra.mxu3 %vm316_vm0, %v303_v28 }
  0x4b   : > { %779 = vmatmul.msk.bf16.gmra.mxu0 %vm316_vm0, %v299_v20 }
  0x5b   : > { %780 = vmatmul.msk.bf16.gmra.mxu0 %vm316_vm0, %v300_v27 }
  0x98   : > { %v350_v33 = vpop.f32.mrf.mxu0 }
  0x99   : > { %v351_v35 = vadd.f32 %v875_v34, %v350_v33 }
  0x9b   : > { %v390_v38 = vmax.f32 %v351_v35, 0.0 }
  0xa0   : > { %v352_v36 = vpop.f32.mrf.mxu0  ;;  %v375_v63 = vpop.f32.mrf.mxu3 }
  0xa1   : > { %v353_v37 = vadd.f32 %v875_v34, %v352_v36  ;;  %v376_v8 = vadd.f32 %v875_v34, %v375_v63 }
  0xa3   : > { %v391_v39 = vmax.f32 %v353_v37, 0.0  ;;  %v400_v10 = vmax.f32 %v376_v8, 0.0 }
  0xa5   : > { %v406_v40 = vpack.c.bf16 %v391_v39, %v390_v38 }
  0xa7   : > { %490 = vmatmul.bf16.vlgmr.msra.gmra.mxu1 %v406_v40 }
  0xa8   : > { %v355_v41 = vpop.f32.mrf.mxu0  ;;  %v377_v3 = vpop.f32.mrf.mxu3 }
  0xa9   : > { %v356_v42 = vadd.f32 %v875_v34, %v355_v41  ;;  %v378_v9 = vadd.f32 %v875_v34, %v377_v3 }
  0xab   : > { %v392_v45 = vmax.f32 %v356_v42, 0.0  ;;  %v401_v11 = vmax.f32 %v378_v9, 0.0 }
  0xad   : > { %v411_v12 = vpack.c.bf16 %v401_v11, %v400_v10 }
  0xb0   : > { %v357_v43 = vpop.f32.mrf.mxu0  ;;  %v380_v7 = vpop.f32.mrf.mxu3 }
  0xb1   : > { %v358_v44 = vadd.f32 %v875_v34, %v357_v43  ;;  %v381_v14 = vadd.f32 %v875_v34, %v380_v7 }
  0xb3   : > { %v393_v46 = vmax.f32 %v358_v44, 0.0  ;;  %v402_v17 = vmax.f32 %v381_v14, 0.0 }
  0xb5   : > { %v407_v47 = vpack.c.bf16 %v393_v46, %v392_v45 }
  0xb7   : > { %495 = vmatmul.bf16.gmra.mxu1 %v407_v47 }
  0xb8   : > { %v360_v48 = vpop.f32.mrf.mxu0  ;;  %v382_v13 = vpop.f32.mrf.mxu3 }
  0xb9   : > { %v361_v49 = vadd.f32 %v875_v34, %v360_v48  ;;  %v383_v15 = vadd.f32 %v875_v34, %v382_v13 }
  0xbb   : > { %v394_v52 = vmax.f32 %v361_v49, 0.0  ;;  %v403_v18 = vmax.f32 %v383_v15, 0.0 }
  0xbd   : > { %v412_v19 = vpack.c.bf16 %v403_v18, %v402_v17 }
  0xc0   : > { %v362_v50 = vpop.f32.mrf.mxu0  ;;  %v385_v16 = vpop.f32.mrf.mxu3 }
  0xc1   : > { %v363_v51 = vadd.f32 %v875_v34, %v362_v50  ;;  %v386_v21 = vadd.f32 %v875_v34, %v385_v16 }
  0xc3   : > { %v395_v53 = vmax.f32 %v363_v51, 0.0  ;;  %v404_v23 = vmax.f32 %v386_v21, 0.0 }
  0xc5   : > { %v408_v54 = vpack.c.bf16 %v395_v53, %v394_v52 }
  0xc7   : > { %500 = vmatmul.bf16.gmra.mxu1 %v408_v54 }
  0xc8   : > { %v365_v55 = vpop.f32.mrf.mxu0  ;;  %v387_v20 = vpop.f32.mrf.mxu3 }
  0xc9   : > { %v366_v56 = vadd.f32 %v875_v34, %v365_v55  ;;  %v388_v22 = vadd.f32 %v875_v34, %v387_v20 }
  0xcb   : > { %v396_v59 = vmax.f32 %v366_v56, 0.0  ;;  %v405_v24 = vmax.f32 %v388_v22, 0.0 }
  0xcd   : > { %v413_v25 = vpack.c.bf16 %v405_v24, %v404_v23 }
  0xd0   : > { %v367_v57 = vpop.f32.mrf.mxu0 }
  0xd1   : > { %v368_v58 = vadd.f32 %v875_v34, %v367_v57 }
  0xd3   : > { %v397_v60 = vmax.f32 %v368_v58, 0.0 }
  0xd5   : > { %v409_v61 = vpack.c.bf16 %v397_v60, %v396_v59 }
  0xd7   : > { %505 = vmatmul.bf16.gmra.mxu1 %v409_v61 }
  0xd8   : > { %v370_v62 = vpop.f32.mrf.mxu0 }
  0xd9   : > { %v371_v0 = vadd.f32 %v875_v34, %v370_v62 }
  0xdb   : > { %v398_v4 = vmax.f32 %v371_v0, 0.0 }
  0xe0   : > { %v372_v1 = vpop.f32.mrf.mxu0 }
  0xe1   : > { %v373_v2 = vadd.f32 %v875_v34, %v372_v1 }
  0xe3   : > { %v399_v5 = vmax.f32 %v373_v2, 0.0 }
  0xe5   : > { %v410_v6 = vpack.c.bf16 %v399_v5, %v398_v4 }
  0xe7   : > { %510 = vmatmul.bf16.vlgmr.msra.gmra.mxu2 %v410_v6 }
  0xf7   : > { %515 = vmatmul.bf16.gmra.mxu2 %v411_v12 }
 0x107   : > { %520 = vmatmul.bf16.gmra.mxu2 %v412_v19 }
 0x117   : > { %525 = vmatmul.bf16.gmra.mxu2 %v413_v25 }
 0x124   : > { %v491_v27 = vpop.f32.mrf.mxu1 }
 0x125   : > { %v492_v28 = vadd.f32 %v1096_v26, %v491_v27 }
 0x127   : > { %v531_v30 = vmax.f32 %v492_v28, 0.0 }
 0x129   : > { %v551_v31 = vmul.f32 %v1102_v29, %v531_v30 }
 0x12b   : > { %567 = vadd.xlane.f32.xlu0 %v551_v31 }
 0x12c   : > { %v493_v32 = vpop.f32.mrf.mxu1 }
 0x12d   : > { %v494_v33 = vadd.f32 %v1096_v26, %v493_v32 }
 0x12f   : > { %v532_v34 = vmax.f32 %v494_v33, 0.0 }
 0x131   : > { %v552_v35 = vmul.f32 %v1102_v29, %v532_v34 }
 0x133   : > { %569 = vadd.xlane.f32.xlu0 %v552_v35 }
 0x134   : > { %v496_v36 = vpop.f32.mrf.mxu1 }
 0x135   : > { %v497_v37 = vadd.f32 %v1096_v26, %v496_v36  ;;  %v633_v36 = vlaneseq }
 0x137   : > { %v533_v38 = vmax.f32 %v497_v37, 0.0 }
 0x139   : > { %v553_v39 = vmul.f32 %v1102_v29, %v533_v38 }
 0x13b   : > { %571 = vadd.xlane.f32.xlu1 %v553_v39 }
 0x13c   : > { %v498_v40 = vpop.f32.mrf.mxu1 }
 0x13d   : > { %v499_v41 = vadd.f32 %v1096_v26, %v498_v40  ;;  %v1135_v40 = vand.u32 127, %v633_v36 }
 0x13f   : > { %v534_v42 = vmax.f32 %v499_v41, 0.0  ;;  %v1137_v41 = vstv %s599_s10  ;;  %v692_v36 = vadd.s32 4294967176, %v1135_v40 }
 0x141   : > { %v554_v43 = vmul.f32 %v1102_v29, %v534_v42 }
 0x143   : > { %573 = vadd.xlane.f32.xlu1 %v554_v43  ;;  %v640_v43 = vadd.s32 4294967280, %v1135_v40 }
 0x144   : > { %v501_v44 = vpop.f32.mrf.mxu1 }
 0x145   : > { %v502_v45 = vadd.f32 %v1096_v26, %v501_v44 }
 0x147   : > { %v535_v46 = vmax.f32 %v502_v45, 0.0  ;;  %v644_v45 = vadd.s32 4294967272, %v1135_v40 }
 0x149   : > { %v555_v47 = vmul.f32 %v1102_v29, %v535_v46 }
 0x14b   : > { %575 = vadd.xlane.f32.xlu2 %v555_v47 }
 0x14c   : > { %v503_v48 = vpop.f32.mrf.mxu1 }
 0x14d   : > { %v504_v49 = vadd.f32 %v1096_v26, %v503_v48 }
 0x14f   : > { %v536_v50 = vmax.f32 %v504_v49, 0.0 }
 0x151   : > { %v556_v51 = vmul.f32 %v1102_v29, %v536_v50  ;;  %v648_v50 = vadd.s32 4294967264, %v1135_v40 }
 0x153   : > { %577 = vadd.xlane.f32.xlu2 %v556_v51 }
 0x154   : > { %v506_v52 = vpop.f32.mrf.mxu1 }
 0x155   : > { %v507_v53 = vadd.f32 %v1096_v26, %v506_v52 }
 0x157   : > { %v537_v54 = vmax.f32 %v507_v53, 0.0 }
 0x159   : > { %v557_v55 = vmul.f32 %v1102_v29, %v537_v54 }
 0x15b   : > { %579 = vadd.xlane.f32.xlu0 %v557_v55 }
 0x15c   : > { %v508_v56 = vpop.f32.mrf.mxu1 }
 0x15d   : > { %v509_v57 = vadd.f32 %v1096_v26, %v508_v56  ;;  %v652_v56 = vadd.s32 4294967256, %v1135_v40 }
 0x15f   : > { %v538_v58 = vmax.f32 %v509_v57, 0.0 }
 0x161   : > { %v558_v59 = vmul.f32 %v1102_v29, %v538_v58 }
 0x163   : > { %581 = vadd.xlane.f32.xlu1 %v558_v59  ;;  %v656_v59 = vadd.s32 4294967248, %v1135_v40 }
 0x16a   : > { %v511_v60 = vpop.f32.mrf.mxu2 }
 0x16b   : > { %v512_v61 = vadd.f32 %v1096_v26, %v511_v60 }
 0x16d   : > { %v539_v62 = vmax.f32 %v512_v61, 0.0 }
 0x16f   : > { %v559_v63 = vmul.f32 %v1102_v29, %v539_v62  ;;  %v660_v62 = vadd.s32 4294967240, %v1135_v40 }
 0x171   : > { %583 = vadd.xlane.f32.xlu2 %v559_v63 }
 0x172   : > { %v513_v0 = vpop.f32.mrf.mxu2 }
 0x173   : > { %v514_v1 = vadd.f32 %v1096_v26, %v513_v0 }
 0x175   : > { %v540_v2 = vmax.f32 %v514_v1, 0.0  ;;  %v664_v1 = vadd.s32 4294967232, %v1135_v40 }
 0x177   : > { %v560_v3 = vmul.f32 %v1102_v29, %v540_v2 }
 0x179   : > { %585 = vadd.xlane.f32.xlu0 %v560_v3 }
 0x17a   : > { %v516_v4 = vpop.f32.mrf.mxu2 }
 0x17b   : > { %v517_v5 = vadd.f32 %v1096_v26, %v516_v4 }
 0x17d   : > { %v541_v6 = vmax.f32 %v517_v5, 0.0  ;;  %v668_v5 = vadd.s32 4294967224, %v1135_v40 }
 0x17f   : > { %v561_v7 = vmul.f32 %v1102_v29, %v541_v6 }
 0x181   : > { %587 = vadd.xlane.f32.xlu1 %v561_v7 }
 0x182   : > { %v518_v8 = vpop.f32.mrf.mxu2 }
 0x183   : > { %v519_v9 = vadd.f32 %v1096_v26, %v518_v8 }
 0x185   : > { %v542_v10 = vmax.f32 %v519_v9, 0.0  ;;  %v672_v9 = vadd.s32 4294967216, %v1135_v40 }
 0x187   : > { %v562_v11 = vmul.f32 %v1102_v29, %v542_v10 }
 0x189   : > { %589 = vadd.xlane.f32.xlu2 %v562_v11 }
 0x18a   : > { %v521_v12 = vpop.f32.mrf.mxu2 }
 0x18b   : > { %v522_v13 = vadd.f32 %v1096_v26, %v521_v12 }
 0x18d   : > { %v543_v14 = vmax.f32 %v522_v13, 0.0 }
 0x18f   : > { %v563_v15 = vmul.f32 %v1102_v29, %v543_v14  ;;  %v676_v14 = vadd.s32 4294967208, %v1135_v40 }
 0x191   : > { %591 = vadd.xlane.f32.xlu0 %v563_v15 }
 0x192   : > { %v523_v16 = vpop.f32.mrf.mxu2 }
 0x193   : > { %v524_v17 = vadd.f32 %v1096_v26, %v523_v16 }
 0x195   : > { %v544_v18 = vmax.f32 %v524_v17, 0.0 }
 0x197   : > { %v564_v19 = vmul.f32 %v1102_v29, %v544_v18  ;;  %v680_v18 = vadd.s32 4294967200, %v1135_v40 }
 0x199   : > { %593 = vadd.xlane.f32.xlu1 %v564_v19 }
 0x19a   : > { %v526_v20 = vpop.f32.mrf.mxu2 }
 0x19b   : > { %v527_v21 = vadd.f32 %v1096_v26, %v526_v20 }
 0x19d   : > { %v545_v22 = vmax.f32 %v527_v21, 0.0 }
 0x19e   : > { %v568_v30 = vpop.xlane.xlu0 %567 }
 0x19f   : > { %v565_v23 = vmul.f32 %v1102_v29, %v545_v22  ;;  %v601_v42 = vadd.f32 %v1137_v41, %v568_v30  ;;  %v684_v22 = vadd.s32 4294967192, %v1135_v40 }
 0x1a1   : > { %595 = vadd.xlane.f32.xlu2 %v565_v23  ;;  %v635_v53 = vperm.slane %v601_v42, %v1135_v40 }
 0x1a2   : > { %v528_v24 = vpop.f32.mrf.mxu2 }
 0x1a3   : > { %v529_v25 = vadd.f32 %v1096_v26, %v528_v24  ;;  %v636_v26 = vadd.s32 4294967288, %v1135_v40 }
 0x1a5   : > { %v546_v27 = vmax.f32 %v529_v25, 0.0 }
 0x1a6   : > { %v570_v33 = vpop.xlane.xlu0 %569 }
 0x1a7   : > { %v566_v28 = vmul.f32 %v1102_v29, %v546_v27  ;;  %v602_v29 = vadd.f32 %v1137_v41, %v570_v33  ;;  %v688_v27 = vadd.s32 4294967184, %v1135_v40 }
 0x1a9   : > { %597 = vadd.xlane.f32.xlu0 %v566_v28  ;;  %v637_v48 = vperm.slane %v602_v29, %v636_v26 }
 0x1ab   : > { %v639_v58 = vsel %vm638_vm1, %v637_v48, %v635_v53 }
 0x1ae   : > { %v572_v31 = vpop.xlane.xlu1 %571 }
 0x1af   : > { %v603_v44 = vadd.f32 %v1137_v41, %v572_v31 }
 0x1b1   : > { %v641_v54 = vperm.slane %v603_v44, %v640_v43 }
 0x1b3   : > { %v643_v0 = vsel %vm642_vm2, %v641_v54, %v639_v58 }
 0x1b6   : > { %v574_v34 = vpop.xlane.xlu1 %573 }
 0x1b7   : > { %v604_v46 = vadd.f32 %v1137_v41, %v574_v34 }
 0x1b9   : > { %v645_v55 = vperm.slane %v604_v46, %v644_v45 }
 0x1bb   : > { %v647_v3 = vsel %vm646_vm3, %v645_v55, %v643_v0 }
 0x1be   : > { %v576_v32 = vpop.xlane.xlu2 %575 }
 0x1bf   : > { %v605_v51 = vadd.f32 %v1137_v41, %v576_v32 }
 0x1c1   : > { %v649_v61 = vperm.slane %v605_v51, %v648_v50 }
 0x1c3   : > { %v651_v12 = vsel %vm650_vm4, %v649_v61, %v647_v3 }
 0x1c6   : > { %v578_v35 = vpop.xlane.xlu2 %577 }
 0x1c7   : > { %v606_v57 = vadd.f32 %v1137_v41, %v578_v35 }
 0x1c9   : > { %v653_v4 = vperm.slane %v606_v57, %v652_v56 }
 0x1cb   : > { %v655_v20 = vsel %vm654_vm5, %v653_v4, %v651_v12 }
 0x1ce   : > { %v580_v37 = vpop.xlane.xlu0 %579 }
 0x1cf   : > { %v607_v60 = vadd.f32 %v1137_v41, %v580_v37 }
 0x1d1   : > { %v657_v8 = vperm.slane %v607_v60, %v656_v59 }
 0x1d3   : > { %v659_v24 = vsel %vm658_vm6, %v657_v8, %v655_v20 }
 0x1d6   : > { %v582_v38 = vpop.xlane.xlu1 %581 }
 0x1d7   : > { %v608_v63 = vadd.f32 %v1137_v41, %v582_v38 }
 0x1d9   : > { %v661_v13 = vperm.slane %v608_v63, %v660_v62 }
 0x1db   : > { %v663_v30 = vsel %vm662_vm7, %v661_v13, %v659_v24 }
 0x1e4   : > { %v584_v39 = vpop.xlane.xlu2 %583 }
 0x1e5   : > { %v609_v2 = vadd.f32 %v1137_v41, %v584_v39 }
 0x1e7   : > { %v665_v17 = vperm.slane %v609_v2, %v664_v1 }
 0x1e9   : > { %v667_v32 = vsel %vm666_vm8, %v665_v17, %v663_v30 }
 0x1ec   : > { %v586_v47 = vpop.xlane.xlu0 %585 }
 0x1ed   : > { %v610_v6 = vadd.f32 %v1137_v41, %v586_v47 }
 0x1ef   : > { %v669_v21 = vperm.slane %v610_v6, %v668_v5 }
 0x1f1   : > { %v671_v34 = vsel %vm670_vm9, %v669_v21, %v667_v32 }
 0x1f4   : > { %v588_v49 = vpop.xlane.xlu1 %587 }
 0x1f5   : > { %v611_v10 = vadd.f32 %v1137_v41, %v588_v49 }
 0x1f7   : > { %v673_v25 = vperm.slane %v611_v10, %v672_v9 }
 0x1f9   : > { %v675_v37 = vsel %vm674_vm10, %v673_v25, %v671_v34 }
 0x1fc   : > { %v590_v52 = vpop.xlane.xlu2 %589 }
 0x1fd   : > { %v612_v15 = vadd.f32 %v1137_v41, %v590_v52 }
 0x1ff   : > { %v677_v31 = vperm.slane %v612_v15, %v676_v14 }
 0x201   : > { %v679_v26 = vsel %vm678_vm11, %v677_v31, %v675_v37 }
 0x204   : > { %v592_v7 = vpop.xlane.xlu0 %591 }
 0x205   : > { %v613_v19 = vadd.f32 %v1137_v41, %v592_v7 }
 0x207   : > { %v681_v33 = vperm.slane %v613_v19, %v680_v18 }
 0x209   : > { %v683_v42 = vsel %vm682_vm12, %v681_v33, %v679_v26 }
 0x20c   : > { %v594_v11 = vpop.xlane.xlu1 %593 }
 0x20d   : > { %v614_v23 = vadd.f32 %v1137_v41, %v594_v11 }
 0x20f   : > { %v685_v35 = vperm.slane %v614_v23, %v684_v22 }
 0x211   : > { %v687_v43 = vsel %vm686_vm13, %v685_v35, %v683_v42 }
 0x214   : > { %v596_v16 = vpop.xlane.xlu2 %595 }
 0x215   : > { %v615_v28 = vadd.f32 %v1137_v41, %v596_v16 }
 0x217   : > { %v689_v38 = vperm.slane %v615_v28, %v688_v27 }
 0x219   : > { %v691_v45 = vsel %vm690_vm14, %v689_v38, %v687_v43 }
 0x21c   : > { %v598_v39 = vpop.xlane.xlu0 %597 }
 0x21d   : > { %v616_v29 = vadd.f32 %v1137_v41, %v598_v39 }
 0x21f   : > { %v693_v44 = vperm.slane %v616_v29, %v692_v36 }
 0x221   : > { %v695_v40 = vsel %vm694_vm15, %v693_v44, %v691_v45 }
 0x222   : > { %697 = vst [vmem:[%s272_s18] sm:$0x1] %v695_v40 }
 0x223   : > { %905 = shalt.err (!%p902_p3)
}
 0x224   : > { %836 = dma.vmem_to_hbm [thread:$0]  (%p1023_p5), %s710_s19, 16, %s712_s6, %s699_s20  }
 0x225 PF: > { %p842_p4 = scmp.ge.s32.totalorder %s940_s29, 2  ;;  %s723_s10 = sand.u32 1, %s928_s26  }
 0x226   : > { %s724_s14 = scalar_lea.sflag [#allocation4], %s723_s10 }
 0x227   : > { %p839_p7 = pnand %p842_p4, %p1027_p6 }
 0x229   : > { %p840_p8 = pneg %p839_p7 }
 0x22b   : > { %923 = dma.done.wait (%p840_p8), %s724_s14, 16  }
 0x22c   : > { %925 = vsyncadd (%p840_p8), %s724_s14, 4294967280  ;;  %p18_p9 = scmp.ge.s32.totalorder %s1010_s8, 4   ;;  %s1224_s26 = smov %s932_s27 }
 0x22d   : > { %s1225_s27 = smov %s936_s28  ;;  %s1226_s28 = smov %s1021_s11 }
 0x22e   : > { %s1227_s29 = smov %s1010_s8  ;;  %20 = sbr.rel (!%p18_p9) target bundleno = 5 (0x5), region = 83 }
 0x233   :  { %729 = vsyncpa [#allocation4], 1 }
 0x234   :  { %731 = vsyncpa [#allocation4 + $0x1], 1 }

</bundles_post_ra>
